<compile_context>
chip_gen: v7x
topology: tpu7x:2x2x1
jax: 0.10.0
libtpu: 0.0.40
codegen_flags: <defaults>
</compile_context>

<pallas_src>
import math

import jax
import jax.numpy as jnp
from jax.experimental import pallas as pl
from jax.experimental.pallas import tpu as pltpu


def _ibp_conv_kernel(p0_ref, p1_ref, p2_ref, w_ref, w_abs_ref, b_ref, out_ref):
    """One lane-dense tile of tm output positions for all three bounds.

    p*_ref    : (K, tm)      im2col patch columns (M on the 128-lane axis)
    w_ref     : (Cout, K)    weight matrix
    w_abs_ref : (Cout, K)    |weight|, hoisted to the wrapper
    b_ref     : (Cout, 1)    bias column (broadcasts over lanes)
    out_ref   : (3*Cout, tm) rows [0:C)=z0, [C:2C)=upper, [2C:3C)=lower
    """
    w = w_ref[...]
    w_abs = w_abs_ref[...]
    b = b_ref[...]
    p0 = p0_ref[...]
    p1 = p1_ref[...]
    p2 = p2_ref[...]

    cout = w.shape[0]
    tm = p0.shape[1]

    mu_pat = (p1 + p2) * 0.5            # (K, tm)
    r_pat = (p1 - p2) * 0.5             # (K, tm)

    # z0 and mu share W: a single MXU pass over a 2*tm-wide RHS keeps the
    # (tiny) weight block resident instead of pushing it twice.
    zmu = jnp.dot(w, jnp.concatenate([p0, mu_pat], axis=1),
                  preferred_element_type=jnp.float32)          # (Cout, 2*tm)
    z0 = zmu[:, :tm] + b
    mu = zmu[:, tm:] + b
    rr = jnp.dot(w_abs, r_pat, preferred_element_type=jnp.float32)  # (Cout, tm)

    out_ref[0:cout, :] = z0.astype(out_ref.dtype)
    out_ref[cout:2 * cout, :] = (mu + rr).astype(out_ref.dtype)
    out_ref[2 * cout:3 * cout, :] = (mu - rr).astype(out_ref.dtype)


def _im2col_t(x, kh, kw, stride, padding, ho, wo):
    """NCHW -> (Cin*KH*KW, N*Ho*Wo).  K leads (sublanes), M trails (lanes).

    K is ordered (c, kh, kw) to match PyTorch weight.reshape(Cout, -1);
    M is ordered (n, ho, wo)."""
    n, c, _, _ = x.shape
    xp = jnp.pad(x, ((0, 0), (0, 0), (padding, padding), (padding, padding)))
    cols = []
    for i in range(kh):
        for j in range(kw):
            cols.append(xp[:, :, i:i + stride * ho:stride, j:j + stride * wo:stride])
    pat = jnp.stack(cols, axis=2)            # (n, c, kh*kw, ho, wo)
    pat = pat.transpose(1, 2, 0, 3, 4)       # (c, kh*kw, n, ho, wo)
    return pat.reshape(c * kh * kw, n * ho * wo)


def ibp_conv2d(z0, z_ub, z_lb, weight, bias, *, stride=1, padding=1, tm=512):
    """Pallas IBPConv2d forward (ibp=True path).

    Returns (z0_conv, upper_bound, lower_bound), each NCHW.
    The ibp=False path of the module is just the first output."""
    n, cin, h, w = z0.shape
    cout, _, kh, kw = weight.shape
    ho = (h + 2 * padding - kh) // stride + 1
    wo = (w + 2 * padding - kw) // stride + 1
    m = n * ho * wo
    k = cin * kh * kw

    # Big tiles amortize the ~0.35us/step overhead, but keep >=2 grid steps
    # when possible so v7x's two TensorCores both get work.
    while tm > 128 and pl.cdiv(m, tm) < 2:
        tm //= 2
    m_pad = pl.cdiv(m, tm) * tm

    p0 = _im2col_t(z0, kh, kw, stride, padding, ho, wo)
    p1 = _im2col_t(z_ub, kh, kw, stride, padding, ho, wo)
    p2 = _im2col_t(z_lb, kh, kw, stride, padding, ho, wo)
    if m_pad != m:
        pad = ((0, 0), (0, m_pad - m))
        p0, p1, p2 = (jnp.pad(p, pad) for p in (p0, p1, p2))

    w_mat = weight.reshape(cout, k)          # (Cout, K)
    w_abs = jnp.abs(w_mat)                   # hoisted |W| (grid-invariant input)
    b_col = bias.reshape(cout, 1)

    patch_spec = pl.BlockSpec((k, tm), lambda i: (0, i))
    w_spec = pl.BlockSpec((cout, k), lambda i: (0, 0))
    b_spec = pl.BlockSpec((cout, 1), lambda i: (0, 0))
    out_spec = pl.BlockSpec((3 * cout, tm), lambda i: (0, i))
    out_shape = jax.ShapeDtypeStruct((3 * cout, m_pad), z0.dtype)

    # Rough VMEM budget: double-buffered streams + in-kernel temporaries.
    vmem_est = 4 * (2 * 3 * k * tm + 2 * 3 * cout * tm
                    + 4 * (k + cout) * tm + 2 * cout * k + cout)
    vmem_limit = int(min(48 * 2**20, max(16 * 2**20, 2 * vmem_est)))

    cost = pl.CostEstimate(
        flops=2 * 3 * m * k * cout,
        transcendentals=0,
        bytes_accessed=4 * (3 * m * k + 3 * m * cout + 2 * k * cout + cout))

    out = pl.pallas_call(
        _ibp_conv_kernel,
        out_shape=out_shape,
        grid_spec=pltpu.PrefetchScalarGridSpec(
            num_scalar_prefetch=0,
            grid=(m_pad // tm,),
            in_specs=[patch_spec, patch_spec, patch_spec, w_spec, w_spec, b_spec],
            out_specs=out_spec,
        ),
        compiler_params=pltpu.CompilerParams(
            dimension_semantics=("parallel",),
            vmem_limit_bytes=vmem_limit),
        cost_estimate=cost,
    )(p0, p1, p2, w_mat, w_abs, b_col)

    # (3*Cout, M) -> three NCHW tensors.
    out = out[:, :m].reshape(3, cout, n, ho, wo).transpose(0, 2, 1, 3, 4)
    return out[0], out[1], out[2]


def _ref_conv(x, weight, bias, stride, padding):
    out = jax.lax.conv_general_dilated(
        x, weight, window_strides=(stride, stride),
        padding=((padding, padding), (padding, padding)),
        dimension_numbers=("NCHW", "OIHW", "NCHW"))
    if bias is not None:
        out = out + bias.reshape(1, -1, 1, 1)
    return out


if __name__ == "__main__":
    # Module config: IBPConv2d(in_channels=4, out_channels=8, kernel_size=3,
    #                          stride=1, padding=1, bias=True, ibp=True)
    N, CIN, H, W = 2, 4, 16, 16
    COUT, KSIZE = 8, 3
    STRIDE, PADDING = 1, 1

    key = jax.random.PRNGKey(0)
    kw_, kb_, kx_ = jax.random.split(key, 3)

    # Deterministic init mimicking nn.Conv2d defaults (uniform +-1/sqrt(fan_in)).
    fan_in = CIN * KSIZE * KSIZE
    bound = 1.0 / math.sqrt(fan_in)
    weight = jax.random.uniform(kw_, (COUT, CIN, KSIZE, KSIZE),
                                jnp.float32, -bound, bound)
    bias = jax.random.uniform(kb_, (COUT,), jnp.float32, -bound, bound)

    x = jax.random.normal(kx_, (N, CIN, H, W), jnp.float32)
    eps = 0.1
    z_ub = x + eps     # z[1]
    z_lb = x - eps     # z[2]

    z0_out, ub_out, lb_out = ibp_conv2d(
        x, z_ub, z_lb, weight, bias, stride=STRIDE, padding=PADDING)
    jax.block_until_ready((z0_out, ub_out, lb_out))

    # Reference (pure JAX) to verify semantics of the IBP conv.
    z0_ref = _ref_conv(x, weight, bias, STRIDE, PADDING)
    mu_ref = _ref_conv((z_ub + z_lb) / 2, weight, bias, STRIDE, PADDING)
    r_ref = _ref_conv((z_ub - z_lb) / 2, jnp.abs(weight), None, STRIDE, PADDING)
    ub_ref = mu_ref + r_ref
    lb_ref = mu_ref - r_ref

    assert z0_out.shape == (N, COUT, H, W)
    assert jnp.allclose(z0_out, z0_ref, atol=5e-3, rtol=5e-3)
    assert jnp.allclose(ub_out, ub_ref, atol=5e-3, rtol=5e-3)
    assert jnp.allclose(lb_out, lb_ref, atol=5e-3, rtol=5e-3)

    print("KERNEL_OK")
</pallas_src>

<mosaic_0001>
module attributes {stable_mosaic.version = 11 : i64} {
  func.func @_ibp_conv_kernel(%arg0: i32, %arg1: memref<36x256xf32, #tpu.memory_space<vmem>>, %arg2: memref<36x256xf32, #tpu.memory_space<vmem>>, %arg3: memref<36x256xf32, #tpu.memory_space<vmem>>, %arg4: memref<8x36xf32, #tpu.memory_space<vmem>>, %arg5: memref<8x36xf32, #tpu.memory_space<vmem>>, %arg6: memref<8x1xf32, #tpu.memory_space<vmem>>, %arg7: memref<24x256xf32, #tpu.memory_space<vmem>>) attributes {dimension_semantics = [#tpu.dimension_semantics<parallel>], iteration_bounds = array<i64: 2>, scalar_prefetch = 0 : i64, scratch_operands = 0 : i64, tpu.core_type = #tpu.core_type<tc>, window_params = [{transform_indices = @transform_0, window_bounds = array<i64: 36, 256>}, {transform_indices = @transform_1, window_bounds = array<i64: 36, 256>}, {transform_indices = @transform_2, window_bounds = array<i64: 36, 256>}, {pipeline_mode = #tpu.pipeline_mode<synchronous>, transform_indices = @transform_3, window_bounds = array<i64: 8, 36>}, {pipeline_mode = #tpu.pipeline_mode<synchronous>, transform_indices = @transform_4, window_bounds = array<i64: 8, 36>}, {pipeline_mode = #tpu.pipeline_mode<synchronous>, transform_indices = @transform_5, window_bounds = array<i64: 8, 1>}, {transform_indices = @transform_6, window_bounds = array<i64: 24, 256>}]} {
    %c0 = arith.constant 0 : index
    %c0_0 = arith.constant 0 : index
    %0 = vector.load %arg4[%c0, %c0_0] : memref<8x36xf32, #tpu.memory_space<vmem>>, vector<8x36xf32>
    %c0_1 = arith.constant 0 : index
    %c0_2 = arith.constant 0 : index
    %1 = vector.load %arg5[%c0_1, %c0_2] : memref<8x36xf32, #tpu.memory_space<vmem>>, vector<8x36xf32>
    %c0_3 = arith.constant 0 : index
    %c0_4 = arith.constant 0 : index
    %2 = vector.load %arg6[%c0_3, %c0_4] : memref<8x1xf32, #tpu.memory_space<vmem>>, vector<8x1xf32>
    %c0_5 = arith.constant 0 : index
    %c0_6 = arith.constant 0 : index
    %3 = vector.load %arg1[%c0_5, %c0_6] : memref<36x256xf32, #tpu.memory_space<vmem>>, vector<36x256xf32>
    %c0_7 = arith.constant 0 : index
    %c0_8 = arith.constant 0 : index
    %4 = vector.load %arg2[%c0_7, %c0_8] : memref<36x256xf32, #tpu.memory_space<vmem>>, vector<36x256xf32>
    %c0_9 = arith.constant 0 : index
    %c0_10 = arith.constant 0 : index
    %5 = vector.load %arg3[%c0_9, %c0_10] : memref<36x256xf32, #tpu.memory_space<vmem>>, vector<36x256xf32>
    %6 = arith.addf %4, %5 : vector<36x256xf32>
    %cst = arith.constant 5.000000e-01 : f32
    %7 = vector.broadcast %cst : f32 to vector<36x256xf32>
    %8 = arith.mulf %6, %7 : vector<36x256xf32>
    %9 = arith.subf %4, %5 : vector<36x256xf32>
    %cst_11 = arith.constant 5.000000e-01 : f32
    %10 = vector.broadcast %cst_11 : f32 to vector<36x256xf32>
    %11 = arith.mulf %9, %10 : vector<36x256xf32>
    %12 = tpu.concatenate %3, %8 in 1 : vector<36x256xf32>, vector<36x256xf32> -> vector<36x512xf32>
    %cst_12 = arith.constant dense<0.000000e+00> : vector<8x512xf32>
    %13 = tpu.matmul %0, %12, %cst_12 {dimension_numbers = #tpu.dot_dimension_numbers<[1], [0], [0], [1], [0, 0, 1, 1], [], []>} : vector<8x36xf32>, vector<36x512xf32>, vector<8x512xf32> -> vector<8x512xf32>
    %14 = vector.extract_strided_slice %13 {offsets = [0, 0], sizes = [8, 256], strides = [1, 1]} : vector<8x512xf32> to vector<8x256xf32>
    %15 = vector.broadcast %2 : vector<8x1xf32> to vector<8x256xf32>
    %16 = arith.addf %14, %15 : vector<8x256xf32>
    %17 = vector.extract_strided_slice %13 {offsets = [0, 256], sizes = [8, 256], strides = [1, 1]} : vector<8x512xf32> to vector<8x256xf32>
    %18 = vector.broadcast %2 : vector<8x1xf32> to vector<8x256xf32>
    %19 = arith.addf %17, %18 : vector<8x256xf32>
    %cst_13 = arith.constant dense<0.000000e+00> : vector<8x256xf32>
    %20 = tpu.matmul %1, %11, %cst_13 {dimension_numbers = #tpu.dot_dimension_numbers<[1], [0], [0], [1], [0, 0, 1, 1], [], []>} : vector<8x36xf32>, vector<36x256xf32>, vector<8x256xf32> -> vector<8x256xf32>
    %c0_14 = arith.constant 0 : index
    %c0_15 = arith.constant 0 : index
    %21 = vector.load %arg7[%c0_14, %c0_15] : memref<24x256xf32, #tpu.memory_space<vmem>>, vector<8x256xf32>
    tpu.vector_store %arg7[%c0_14, %c0_15], %16 {strides = array<i32>} : memref<24x256xf32, #tpu.memory_space<vmem>>, vector<8x256xf32>,
    %22 = arith.addf %19, %20 : vector<8x256xf32>
    %c8 = arith.constant 8 : index
    %c0_16 = arith.constant 0 : index
    %23 = vector.load %arg7[%c8, %c0_16] : memref<24x256xf32, #tpu.memory_space<vmem>>, vector<8x256xf32>
    tpu.vector_store %arg7[%c8, %c0_16], %22 {strides = array<i32>} : memref<24x256xf32, #tpu.memory_space<vmem>>, vector<8x256xf32>,
    %24 = arith.subf %19, %20 : vector<8x256xf32>
    %c16 = arith.constant 16 : index
    %c0_17 = arith.constant 0 : index
    %25 = vector.load %arg7[%c16, %c0_17] : memref<24x256xf32, #tpu.memory_space<vmem>>, vector<8x256xf32>
    tpu.vector_store %arg7[%c16, %c0_17], %24 {strides = array<i32>} : memref<24x256xf32, #tpu.memory_space<vmem>>, vector<8x256xf32>,
    return
  }
  func.func @transform_0(%arg0: i32) -> (i32, i32) {
    %c0_i32 = arith.constant 0 : i32
    %c0_i32_0 = arith.constant 0 : i32
    return %c0_i32, %arg0 : i32, i32
  }
  func.func @transform_1(%arg0: i32) -> (i32, i32) {
    %c0_i32 = arith.constant 0 : i32
    %c0_i32_0 = arith.constant 0 : i32
    return %c0_i32, %arg0 : i32, i32
  }
  func.func @transform_2(%arg0: i32) -> (i32, i32) {
    %c0_i32 = arith.constant 0 : i32
    %c0_i32_0 = arith.constant 0 : i32
    return %c0_i32, %arg0 : i32, i32
  }
  func.func @transform_3(%arg0: i32) -> (i32, i32) {
    %c0_i32 = arith.constant 0 : i32
    %c0_i32_0 = arith.constant 0 : i32
    %c0_i32_1 = arith.constant 0 : i32
    return %c0_i32, %c0_i32_0 : i32, i32
  }
  func.func @transform_4(%arg0: i32) -> (i32, i32) {
    %c0_i32 = arith.constant 0 : i32
    %c0_i32_0 = arith.constant 0 : i32
    %c0_i32_1 = arith.constant 0 : i32
    return %c0_i32, %c0_i32_0 : i32, i32
  }
  func.func @transform_5(%arg0: i32) -> (i32, i32) {
    %c0_i32 = arith.constant 0 : i32
    %c0_i32_0 = arith.constant 0 : i32
    %c0_i32_1 = arith.constant 0 : i32
    return %c0_i32, %c0_i32_0 : i32, i32
  }
  func.func @transform_6(%arg0: i32) -> (i32, i32) {
    %c0_i32 = arith.constant 0 : i32
    %c0_i32_0 = arith.constant 0 : i32
    return %c0_i32, %arg0 : i32, i32
  }
}

</mosaic_0001>

<bundles_post_ra>
// kernel: tpu_custom_call.1
= control target key start
LH: loop header
LB: loop body
LE: loop exit
PB: predicated region body
PF: predicated region fallthrough
CT: control target
= control target key end

     0   :  { %s1462_s0 = inlined_call_operand.hbm [shape: f32[36,512], index: 0, kind: input, shape index: {}]   ;;  %s1463_s1 = inlined_call_operand.hbm [shape: f32[36,512], index: 1, kind: input, shape index: {}]   ;;  %s1464_s2 = inlined_call_operand.hbm [shape: f32[36,512], index: 2, kind: input, shape index: {}]   ;;  %s1465_s3 = inlined_call_operand.vmem [shape: f32[8,36], index: 3, kind: input, shape index: {}]   ;;  %s1466_s4 = inlined_call_operand.vmem [shape: f32[8,36], index: 4, kind: input, shape index: {}]   ;;  %s1467_s5 = inlined_call_operand.vmem [shape: f32[8,1], index: 5, kind: input, shape index: {}]   ;;  %s1468_s6 = inlined_call_operand.hbm [shape: f32[24,512], index: 6, kind: output, shape index: {}]  }
   0x1   :  { %1482 = sst [smem:[#allocation16_spill]] %s1462_s0 }
   0x2   :  { %1483 = sst [smem:[#allocation17_spill]] %s1463_s1 }
   0x3   :  { %11 = vsyncpa [#allocation3], 0 }
   0x4   :  { %13 = vsyncpa [#allocation3 + $0x1], 0 }
   0x5   :  { %14 = vsyncpa [#allocation6], 0 }
   0x6   :  { %16 = vsyncpa [#allocation6 + $0x1], 0 }
   0x7   :  { %17 = vsyncpa [#allocation4], 0 }
   0x8   :  { %19 = vsyncpa [#allocation4 + $0x1], 0  ;;  %s1142_s21 = smov 0   ;;  %s1144_s22 = smov 0  }
   0x9   :  { %s1146_s23 = smov 0   ;;  %s1148_s24 = smov 0  }
   0xa LB: > { %1484 = sst [smem:[#allocation12_spill]] %s1093_s24  ;;  %s1163_s25 = sadd.s32 4294967295, %s1093_s24   ;;  %s1093_s24 = sphi %s1148_s24, %s1509_s24   ;;  %s1089_s23 = sphi %s1146_s23, %s1513_s23   ;;  %s1085_s22 = sphi %s1144_s22, %s1512_s22   ;;  %s1081_s21 = sphi %s1142_s21, %s1511_s21  }
   0xb   : > { %s812_s26 = sadd.s32 4294967294, %s1093_s24   ;;  %s1167_s27 = sadd.s32 1, %s1093_s24  }
   0xc   : > { %1485 = sst [smem:[#allocation13_spill]] %s1167_s27  ;;  %s32_s28 = sadd.s32 1, %s1089_s23 }
   0xd   : > { %s29_s29 = ssub.s32 %s1093_s24, %s1167_s27  ;;  %p39_p0 = scmp.ne.s32.totalorder %s1089_s23, %s1085_s22 }
   0xe   : > { %p30_p1 = scmp.eq.s32.totalorder %s29_s29, 0  ;;  %p40_p2 = scmp.eq.s32.totalorder %s1093_s24, 0 }
   0xf   : > { %p45_p3 = scmp.ne.s32.totalorder %s1085_s22, %s1081_s21  ;;  %p46_p4 = scmp.eq.s32.totalorder %s1163_s25, 0 }
  0x10   : > { %s1179_s30 = scalar_select %p30_p1, %s1089_s23, %s32_s28  }
  0x11   : > { %p41_p5 = por %p40_p2, %p39_p0  ;;  %p1181_p6 = por %p46_p4, %p45_p3 }
  0x12   : > { %1486 = sst [smem:[#allocation14_spill]] %s1179_s30  ;;  %p184_p7 = scmp.eq.s32.totalorder %s1163_s25, 1 }
  0x13   : > { %s1487_s7 = scalar_select %p1181_p6, 1, 0 }
  0x14   : > { %p190_p8 = scmp.eq.s32.totalorder %s812_s26, 1  ;;  %p890_p10 = scmp.lt.s32.totalorder %s1093_s24, 2 }
  0x15   : > { %p1188_p11 = por %p184_p7, %p39_p0  ;;  %s1469_s10 = sand.u32 1, %s1089_s23  }
  0x16   : > { %p1192_p12 = por %p190_p8, %p45_p3  ;;  %s1198_s11 = sshll.u32 %s1093_s24, 8 }
  0x17   : > { %s1488_s8 = scalar_select %p1188_p11, 1, 0 }
  0x18   : > { %s1489_s9 = scalar_select %p1192_p12, 1, 0 }
  0x19   : > { %s1202_s12 = smul.u32 80, %s1469_s10  ;;  %p1204_p13 = pnand %p890_p10, %p41_p5 }
  0x1a   : > { %1490 = sst [smem:[#allocation15_spill]] %s1489_s9  ;;  %s240_s14 = sand.u32 1, %s1093_s24  }
  0x1b   : > { %s1492_s1 = sld [smem:[#allocation17_spill]]  ;;  %s244_s18 = scalar_lea.vmem [#allocation5], %s1202_s12 }
  0x1c   : > { %s251_s19 = sshll.u32 %s244_s18, 4  ;;  %s1220_s20 = scalar_lea.sflag [#allocation6], %s240_s14  ;;  %s1217_s19 = int_to_ptr.vmem [resolvable:$true] %s251_s19 }
  0x1d   : > { %p1226_p3 = pneg %p1204_p13 }
  0x21   : > { %s1213_s17 = scalar_lea.hbm %s1492_s1, %s1198_s11  ;;  %s938_s16 = scalar_lea.hbm %s1492_s1, 2560 }
  0x22   : > { %s933_s26 = scalar_lea.hbm %s1213_s17, 1280  ;;  %p939_p7 = scmp.lt.u32.totalorder %s1213_s17, %s1492_s1 }
  0x23   : > { %p934_p2 = scmp.ne.s32.totalorder %s1213_s17, %s933_s26  ;;  %p940_p8 = scmp.lt.u32.totalorder %s938_s16, %s933_s26 }
  0x24   : > { %p942_p9 = scmp.lt.u32.totalorder %s933_s26, %s1213_s17 }
  0x25   : > { %p936_p4 = pnand %p1226_p3, %p934_p2  ;;  %p941_p10 = por %p940_p8, %p939_p7 }
  0x27   : > { %p937_p5 = pneg %p936_p4  ;;  %p943_p0 = por %p942_p9, %p941_p10 }
  0x29   : > { %p944_p1 = pnand %p943_p0, %p937_p5 }
  0x2b   : > { %947 = shalt.err (!%p944_p1)
}
  0x2c   : > { %s948_s14 = scalar_lea.vmem %s1217_s19, 1280  ;;  %s1095_s29 = smov [#allocation5]  }
  0x2d   : > { %p949_p2 = scmp.ne.s32.totalorder %s1217_s19, %s948_s14  ;;  %s953_s15 = sshll.u32 %s1095_s29, 4  ;;  %s954_s15 = int_to_ptr.vmem [resolvable:$false] %s953_s15 }
  0x2e   : > { %s955_s10 = scalar_lea.vmem %s954_s15, 2560  ;;  %p956_p11 = scmp.lt.s32.totalorder %s1217_s19, %s954_s15 }
  0x2f   : > { %p951_p4 = pnand %p949_p2, %p1226_p3  ;;  %p957_p6 = scmp.lt.s32.totalorder %s955_s10, %s948_s14 }
  0x31   : > { %p952_p12 = pneg %p951_p4  ;;  %p958_p7 = por %p957_p6, %p956_p11 }
  0x33   : > { %p959_p8 = pnand %p958_p7, %p952_p12 }
  0x35   : > { %962 = shalt.err (!%p959_p8)
}
  0x36   : > { %s1472_s26 = smov 512   ;;  %s1474_s16 = smov 256  }
  0x37   : > { %s1476_s18 = smov 16   ;;  %p1494_p6 = scmp.lt.s32.totalorder %s1093_s24, 3 }
  0x38   : > { %882 = dma.hbm_to_vmem [thread:$0]  (!%p1204_p13), %s1213_s17, 1280, %s1217_s19, %s1220_s20, %s1472_s26, %s1474_s16, %s1476_s18  }
  0x39   : > { %p1495_p9 = scmp.ge.s32.totalorder %s1093_s24, 1  ;;  %s1497_s0 = sld [smem:[#allocation16_spill]] }
  0x3a   : > { %s223_s1 = scalar_lea.vmem [#allocation2], %s1202_s12  ;;  %s1274_s26 = scalar_lea.hbm %s1464_s2, %s1198_s11 }
  0x3b   : > { %p1257_p11 = pnand %p1495_p9, %p1494_p6  ;;  %s230_s30 = sshll.u32 %s223_s1, 4  ;;  %s1268_s30 = int_to_ptr.vmem [resolvable:$true] %s230_s30 }
  0x3c   : > { %s1498_s16 = sand.u32 1, %s1089_s23  }
  0x3d   : > { %s1496_s14 = scalar_select %p1257_p11, 1, 0 }
  0x3e   : > { %s1278_s18 = scalar_lea.sflag [#allocation3], %s1498_s16 }
  0x3f   : > { %s1265_s10 = scalar_lea.hbm %s1497_s0, %s1198_s11  ;;  %s968_s24 = scalar_lea.hbm %s1497_s0, 2560 }
  0x40   : > { %s963_s27 = scalar_lea.hbm %s1265_s10, 1280  ;;  %p969_p5 = scmp.lt.u32.totalorder %s1265_s10, %s1497_s0 }
  0x41   : > { %p964_p12 = scmp.ne.s32.totalorder %s1265_s10, %s963_s27  ;;  %p970_p10 = scmp.lt.u32.totalorder %s968_s24, %s963_s27 }
  0x42   : > { %p972_p4 = scmp.lt.u32.totalorder %s963_s27, %s1265_s10 }
  0x43   : > { %p966_p0 = pnand %p964_p12, %p1226_p3  ;;  %p971_p2 = por %p970_p10, %p969_p5 }
  0x45   : > { %p967_p1 = pneg %p966_p0  ;;  %p973_p7 = por %p972_p4, %p971_p2 }
  0x47   : > { %p974_p8 = pnand %p973_p7, %p967_p1 }
  0x49   : > { %977 = shalt.err (!%p974_p8)
}
  0x4a   : > { %s978_s11 = scalar_lea.vmem %s1268_s30, 1280  ;;  %s1099_s16 = smov [#allocation2]  }
  0x4b   : > { %p979_p6 = scmp.ne.s32.totalorder %s1268_s30, %s978_s11  ;;  %s983_s17 = sshll.u32 %s1099_s16, 4  ;;  %s984_s17 = int_to_ptr.vmem [resolvable:$false] %s983_s17 }
  0x4c   : > { %s985_s9 = scalar_lea.vmem %s984_s17, 2560  ;;  %p986_p0 = scmp.lt.s32.totalorder %s1268_s30, %s984_s17 }
  0x4d   : > { %p981_p9 = pnand %p979_p6, %p1226_p3  ;;  %p987_p11 = scmp.lt.s32.totalorder %s985_s9, %s978_s11 }
  0x4f   : > { %p982_p12 = pneg %p981_p9  ;;  %p988_p5 = por %p987_p11, %p986_p0 }
  0x51   : > { %p989_p10 = pnand %p988_p5, %p982_p12 }
  0x53   : > { %992 = shalt.err (!%p989_p10)
}
  0x54   : > { %s1499_s24 = smov 16   ;;  %s1500_s27 = smov 256  }
  0x55   : > { %s1501_s19 = smov 512   ;;  %s265_s29 = scalar_lea.vmem [#allocation7], %s1202_s12 }
  0x56   : > { %879 = dma.hbm_to_vmem [thread:$0]  (!%p1204_p13), %s1265_s10, 1280, %s1268_s30, %s1278_s18, %s1501_s19, %s1500_s27, %s1499_s24  }
  0x57   : > { %s272_s15 = sshll.u32 %s265_s29, 4  ;;  %s993_s1 = scalar_lea.hbm %s1274_s26, 1280  ;;  %s1306_s15 = int_to_ptr.vmem [resolvable:$true] %s272_s15 }
  0x58   : > { %p994_p11 = scmp.ne.s32.totalorder %s1274_s26, %s993_s1  ;;  %s998_s17 = scalar_lea.hbm %s1464_s2, 2560 }
  0x59   : > { %p999_p4 = scmp.lt.u32.totalorder %s1274_s26, %s1464_s2  ;;  %p1000_p7 = scmp.lt.u32.totalorder %s998_s17, %s993_s1 }
  0x5a   : > { %p996_p1 = pnand %p994_p11, %p1226_p3  ;;  %p1002_p6 = scmp.lt.u32.totalorder %s993_s1, %s1274_s26 }
  0x5b   : > { %p1001_p8 = por %p1000_p7, %p999_p4 }
  0x5c   : > { %p997_p2 = pneg %p996_p1 }
  0x5d   : > { %p1003_p9 = por %p1002_p6, %p1001_p8 }
  0x5f   : > { %p1004_p12 = pnand %p1003_p9, %p997_p2 }
  0x61   : > { %1007 = shalt.err (!%p1004_p12)
}
  0x62   : > { %s1008_s30 = scalar_lea.vmem %s1306_s15, 1280  ;;  %s1100_s12 = smov [#allocation7]  }
  0x63   : > { %p1009_p0 = scmp.ne.s32.totalorder %s1306_s15, %s1008_s30  ;;  %s1013_s18 = sshll.u32 %s1100_s12, 4  ;;  %s1014_s18 = int_to_ptr.vmem [resolvable:$false] %s1013_s18 }
  0x64   : > { %s1015_s0 = scalar_lea.vmem %s1014_s18, 2560  ;;  %p1016_p11 = scmp.lt.s32.totalorder %s1306_s15, %s1014_s18 }
  0x65   : > { %p1011_p5 = pnand %p1009_p0, %p1226_p3  ;;  %p1017_p1 = scmp.lt.s32.totalorder %s1015_s0, %s1008_s30 }
  0x67   : > { %p1012_p10 = pneg %p1011_p5  ;;  %p1018_p4 = por %p1017_p1, %p1016_p11 }
  0x69   : > { %p1019_p7 = pnand %p1018_p4, %p1012_p10 }
  0x6b   : > { %1022 = shalt.err (!%p1019_p7)
}
  0x6c   : > { %885 = dma.hbm_to_vmem [thread:$0]  (!%p1204_p13), %s1274_s26, 1280, %s1306_s15, %s1220_s20, %s1501_s19, %s1500_s27, %s1499_s24  }
  0x6d   : > { %p1502_p3 = scmp.ne.s32.totalorder %s1496_s14, 0 }
  0x6e   : > { %s1336_s28 = sand.u32 (!%p1502_p3), 1, %s1085_s22   ;;  %p1503_p2 = scmp.ne.s32.totalorder (!%p1502_p3), %s1487_s7, 0 }
  0x6f   : > { %284 = sbr.rel (%p1502_p3) target bundleno = 378 (0x17a), region = 44  ;;  %s287_s13 = scalar_lea.sflag (!%p1502_p3), [#allocation3], %s1336_s28 }
  0x70   : > { %s1339_s10 = smul.u32 (!%p1502_p3), 80, %s1336_s28 }
  0x72   : > { %s1343_s29 = scalar_lea.vmem (!%p1502_p3), [#allocation2], %s1339_s10 }
  0x76   : > { %1068 = dma.done.wait (%p1503_p2), %s287_s13, 1280  }
  0x77   : > { %1070 = vsyncadd (%p1503_p2), %s287_s13, 4294966016  ;;  %s295_s20 = sand.u32 1, %s1163_s25   ;;  %s1351_s14 = scalar_lea.vmem [#allocation5], %s1339_s10 }
  0x78   : > { %s296_s26 = scalar_lea.sflag [#allocation6], %s295_s20 }
  0x79   : > { %1072 = dma.done.wait (%p1503_p2), %s296_s26, 2560  }
  0x7a   : > { %1074 = vsyncadd (%p1503_p2), %s296_s26, 4294964736  ;;  %v1101_v0 = vmov 0.0   ;;  %v1102_v1 = vmov 0   ;;  %v355_v2 = vld [vmem:[%s1343_s29 + $0x8] sm:$0xff]  ;;  %v357_v3 = vld [vmem:[%s1343_s29 + $0x18] sm:$0xff]  ;;  %s1370_s7 = scalar_lea.vmem [#allocation7], %s1339_s10 }
  0x7b   : > { %505 = vmatprep.mubr.f32.mxu0 %v1101_v0  ;;  %576 = vmatprep.mubr.f32.mxu1 %v1101_v0  ;;  %v354_v4 = vld [vmem:[%s1343_s29] sm:$0xff]  ;;  %v839_v5 = vpack.c.bf16 %v357_v3, %v355_v2  ;;  %v356_v6 = vld [vmem:[%s1343_s29 + $0x10] sm:$0xff]  ;;  %v359_v7 = vld [vmem:[%s1343_s29 + $0x28] sm:$0xff]  ;;  %vm428_vm0 = vcmask 1043456   ;;  %vm424_vm1 = vcmask 293888   ;;  %s867_s16 = smul.u32 48, %s1336_s28 }
  0x7c   : > { %932 = vset.pattern.permute.xlu0 %v1102_v1  ;;  %v361_v8 = vld [vmem:[%s1343_s29 + $0x38] sm:$0xff]  ;;  %v841_v9 = vpack.c.bf16 %v356_v6, %v354_v4  ;;  %v358_v11 = vld [vmem:[%s1343_s29 + $0x20] sm:$0xff]  ;;  %v360_v12 = vld [vmem:[%s1343_s29 + $0x30] sm:$0xff]  ;;  %s838_s30 = sshll.u32 %s1163_s25, 8  ;;  %s683_s25 = scalar_lea.sflag [#allocation4], %s1336_s28 }
  0x7d   : > { %v843_v10 = vpack.c.bf16 %v361_v8, %v359_v7  ;;  %v365_v13 = vld [vmem:[%s1351_s14 + $0x8] sm:$0xff]  ;;  %840 = vmatprep.subr.bf16.mxu0 %v839_v5  ;;  %v845_v14 = vpack.c.bf16 %v360_v12, %v358_v11  ;;  %v367_v15 = vld [vmem:[%s1351_s14 + $0x18] sm:$0xff]  ;;  %v364_v22 = vld [vmem:[%s1351_s14] sm:$0xff]  ;;  %s346_s17 = scalar_lea.vmem [#allocation8], %s867_s16  ;;  %s1418_s0 = scalar_lea.hbm %s1468_s6, %s838_s30 }
  0x7e   : > { %v375_v16 = vld [vmem:[%s1370_s7 + $0x8] sm:$0xff]  ;;  %v377_v17 = vld [vmem:[%s1370_s7 + $0x18] sm:$0xff]  ;;  %842 = vmatpush1.bf16.msra.mxu0 %v841_v9  ;;  %v366_v23 = vld [vmem:[%s1351_s14 + $0x10] sm:$0xff]  ;;  %s696_s9 = sshll.u32 %s346_s17, 4  ;;  %p1504_p8 = scmp.ne.s32.totalorder %s1488_s8, 0  ;;  %s1413_s9 = int_to_ptr.vmem [resolvable:$true] %s696_s9 }
  0x7f   : > { %v385_v18 = vadd.f32 %v375_v16, %v365_v13  ;;  %v387_v19 = vadd.f32 %v377_v17, %v367_v15  ;;  %v405_v20 = vsub.f32 %v365_v13, %v375_v16  ;;  %v407_v21 = vsub.f32 %v367_v15, %v377_v17  ;;  %844 = vmatprep.subr.bf16.mxu0 %v843_v10  ;;  %v363_v24 = vld [vmem:[%s1343_s29 + $0x48] sm:$0xf]  ;;  %v374_v25 = vld [vmem:[%s1370_s7] sm:$0xff]  ;;  %v376_v26 = vld [vmem:[%s1370_s7 + $0x10] sm:$0xff]  ;;  %s1023_s10 = scalar_lea.vmem %s1413_s9, 768  ;;  %s1103_s13 = smov [#allocation8]  }
  0x80   : > { %v369_v31 = vld [vmem:[%s1351_s14 + $0x28] sm:$0xff]  ;;  %v384_v32 = vadd.f32 %v374_v25, %v364_v22  ;;  %v386_v33 = vadd.f32 %v376_v26, %v366_v23  ;;  %v404_v34 = vsub.f32 %v364_v22, %v374_v25  ;;  %v406_v35 = vsub.f32 %v366_v23, %v376_v26  ;;  %v362_v36 = vld [vmem:[%s1343_s29 + $0x40] sm:$0xf]  ;;  %v371_v37 = vld [vmem:[%s1351_s14 + $0x38] sm:$0xff]  ;;  %p1024_p13 = scmp.ne.s32.totalorder %s1413_s9, %s1023_s10  ;;  %s1027_s29 = sshll.u32 %s1103_s13, 4  ;;  %s1028_s29 = int_to_ptr.vmem [resolvable:$false] %s1027_s29 }
  0x81   : > { %v395_v27 = vmul.f32 0.5, %v385_v18  ;;  %v397_v28 = vmul.f32 0.5, %v387_v19  ;;  %v415_v29 = vmul.f32 0.5, %v405_v20  ;;  %v417_v30 = vmul.f32 0.5, %v407_v21  ;;  %v379_v38 = vld [vmem:[%s1370_s7 + $0x28] sm:$0xff]  ;;  %v381_v39 = vld [vmem:[%s1370_s7 + $0x38] sm:$0xff]  ;;  %p1030_p12 = scmp.lt.s32.totalorder %s1413_s9, %s1028_s29 }
  0x82   : > { %846 = vmatpush1.bf16.msra.mxu0 %v845_v14  ;;  %v389_v42 = vadd.f32 %v379_v38, %v369_v31  ;;  %v391_v43 = vadd.f32 %v381_v39, %v371_v37  ;;  %v368_v44 = vld [vmem:[%s1351_s14 + $0x20] sm:$0xff]  ;;  %v370_v45 = vld [vmem:[%s1351_s14 + $0x30] sm:$0xff]  ;;  %v394_v47 = vmul.f32 0.5, %v384_v32  ;;  %v396_v48 = vmul.f32 0.5, %v386_v33  ;;  %v373_v57 = vld [vmem:[%s1351_s14 + $0x48] sm:$0xf]  ;;  %p1025_p6 = pnand %p1024_p13, %p1504_p8 }
  0x83   : > { %v847_v40 = vpack.c.bf16 %v397_v28, %v395_v27  ;;  %v855_v41 = vpack.c.bf16 %v417_v30, %v415_v29  ;;  %v378_v46 = vld [vmem:[%s1370_s7 + $0x20] sm:$0xff]  ;;  %822 = vmatprep.subr.msk.mxu0 %vm428_vm0, %v363_v24  ;;  %v414_v49 = vmul.f32 0.5, %v404_v34  ;;  %v416_v50 = vmul.f32 0.5, %v406_v35  ;;  %v380_v52 = vld [vmem:[%s1370_s7 + $0x30] sm:$0xff]  ;;  %v383_v58 = vld [vmem:[%s1370_s7 + $0x48] sm:$0xf] }
  0x84   : > { %v351_v51 = vld [vmem:[%s1465_s3] sm:$0xff]  ;;  %v399_v53 = vmul.f32 0.5, %v389_v42  ;;  %v401_v54 = vmul.f32 0.5, %v391_v43  ;;  %v388_v55 = vadd.f32 %v378_v46, %v368_v44  ;;  %v390_v56 = vadd.f32 %v380_v52, %v370_v45  ;;  %p1026_p9 = pneg %p1025_p6  ;;  %s1029_s20 = scalar_lea.vmem %s1028_s29, 1536 }
  0x85   : > { %848 = vmatprep.subr.bf16.mxu1 %v847_v40  ;;  %v849_v59 = vpack.c.bf16 %v396_v48, %v394_v47  ;;  %v857_v60 = vpack.c.bf16 %v416_v50, %v414_v49  ;;  %v408_v61 = vsub.f32 %v368_v44, %v378_v46  ;;  %v410_v62 = vsub.f32 %v370_v45, %v380_v52  ;;  %v372_v63 = vld [vmem:[%s1351_s14 + $0x40] sm:$0xf]  ;;  %p1031_p0 = scmp.lt.s32.totalorder %s1029_s20, %s1023_s10 }
  0x86   : > { %v382_v1 = vld [vmem:[%s1370_s7 + $0x40] sm:$0xf]  ;;  %823 = vmatpush1.msk.msra.mxu0 %vm428_vm0, %v362_v36  ;;  %v851_v3 = vpack.c.bf16 %v401_v54, %v399_v53  ;;  %v398_v4 = vmul.f32 0.5, %v388_v55  ;;  %v400_v5 = vmul.f32 0.5, %v390_v56  ;;  %v409_v6 = vsub.f32 %v369_v31, %v379_v38 }
  0x87   : > { %v353_v2 = vld [vmem:[%s1467_s5] sm:$0xff]  ;;  %850 = vmatpush1.bf16.msra.mxu1 %v849_v59  ;;  %824 = vmatmul.mubr.msk.f32.vlgmr.msra.gmra.mrb[0].mxu0 %vm424_vm1, %v351_v51  ;;  %v418_v7 = vmul.f32 0.5, %v408_v61  ;;  %v420_v8 = vmul.f32 0.5, %v410_v62  ;;  %v411_v9 = vsub.f32 %v371_v37, %v381_v39  ;;  %v393_v10 = vadd.f32 %v383_v58, %v373_v57  ;;  %p1032_p5 = por %p1031_p0, %p1030_p12 }
  0x88   : > { %585 = vperm.xlu0 %932, %v353_v2   ;;  %856 = vmatprep.subr.bf16.mxu0 %v855_v41  ;;  %v853_v11 = vpack.c.bf16 %v400_v5, %v398_v4  ;;  %v419_v12 = vmul.f32 0.5, %v409_v6  ;;  %v392_v13 = vadd.f32 %v382_v1, %v372_v63  ;;  %v413_v16 = vsub.f32 %v373_v57, %v383_v58 }
  0x89   : > { %852 = vmatprep.subr.bf16.mxu1 %v851_v3  ;;  %858 = vmatpush1.bf16.msra.mxu0 %v857_v60  ;;  %v421_v14 = vmul.f32 0.5, %v411_v9  ;;  %v403_v15 = vmul.f32 0.5, %v393_v10  ;;  %v861_v17 = vpack.c.bf16 %v420_v8, %v418_v7  ;;  %v412_v18 = vsub.f32 %v372_v63, %v382_v1  ;;  %p1033_p10 = pnand %p1032_p5, %p1026_p9 }
  0x8a   : > { %665 = vmatprep.mubr.f32.mxu0 %v1101_v0  ;;  %v402_v20 = vmul.f32 0.5, %v392_v13  ;;  %v423_v21 = vmul.f32 0.5, %v413_v16  ;;  %v352_v0 = vld [vmem:[%s1466_s4] sm:$0xff] }
  0x8b   : > { %854 = vmatpush1.bf16.msra.mxu1 %v853_v11  ;;  %v859_v19 = vpack.c.bf16 %v421_v14, %v419_v12  ;;  %v422_v22 = vmul.f32 0.5, %v412_v18 }
  0x8c   : > { %825 = vmatprep.subr.msk.mxu1 %vm428_vm0, %v403_v15 }
  0x8d   : > { %860 = vmatprep.subr.bf16.mxu0 %v859_v19 }
  0x8e   : > { %862 = vmatpush1.bf16.msra.mxu0 %v861_v17 }
  0x8f   : > { %826 = vmatpush1.msk.msra.mxu1 %vm428_vm0, %v402_v20  ;;  %828 = vmatprep.subr.msk.mxu0 %vm428_vm0, %v423_v21 }
  0x90   : > { %827 = vmatmul.mubr.msk.f32.vlgmr.msra.gmra.mrb[0].mxu1 %vm424_vm1, %v351_v51 }
  0x92   : > { %829 = vmatpush1.msk.msra.mxu0 %vm428_vm0, %v422_v22 }
  0x93   : > { %830 = vmatmul.mubr.msk.f32.vlgmr.msra.gmra.mrb[2].mxu0 %vm424_vm1, %v352_v0 }
 0x107   : > { %v586_v23 = vpop.permute.xlu0 %585 }
 0x15a   : > { %v507_v24 = vpop.f32.mrb[0].mxu0 }
 0x15b   : > { %v588_v25 = vadd.f32 %v586_v23, %v507_v24  ;;  %v509_v26 = vpop.f32.mrb[1].mxu0 }
 0x15c   : > { %v589_v27 = vadd.f32 %v586_v23, %v509_v26 }
 0x15d   : > { %672 = vst [vmem:[%s346_s17] sm:$0xff] %v588_v25 }
 0x15e   : > { %673 = vst [vmem:[%s346_s17 + $0x8] sm:$0xff] %v589_v27 }
 0x163   : > { %v578_v28 = vpop.f32.mrb[0].mxu1 }
 0x164   : > { %v590_v29 = vadd.f32 %v586_v23, %v578_v28  ;;  %v580_v30 = vpop.f32.mrb[1].mxu1 }
 0x165   : > { %v591_v31 = vadd.f32 %v586_v23, %v580_v30 }
 0x166   : > { %v667_v32 = vpop.f32.mrb[2].mxu0 }
 0x167   : > { %v674_v33 = vadd.f32 %v667_v32, %v590_v29  ;;  %v678_v34 = vsub.f32 %v590_v29, %v667_v32  ;;  %v669_v35 = vpop.f32.mrb[3].mxu0 }
 0x168   : > { %v675_v36 = vadd.f32 %v669_v35, %v591_v31  ;;  %v679_v37 = vsub.f32 %v591_v31, %v669_v35 }
 0x169   : > { %676 = vst [vmem:[%s346_s17 + $0x10] sm:$0xff] %v674_v33  ;;  %680 = vst [vmem:[%s346_s17 + $0x20] sm:$0xff] %v678_v34 }
 0x16a   : > { %677 = vst [vmem:[%s346_s17 + $0x18] sm:$0xff] %v675_v36  ;;  %681 = vst [vmem:[%s346_s17 + $0x28] sm:$0xff] %v679_v37 }
 0x16b   : > { %1036 = shalt.err (!%p1033_p10)
}
 0x16c   : > { %s1037_s26 = scalar_lea.hbm %s1418_s0, 768  ;;  %s1041_s24 = scalar_lea.hbm %s1468_s6, 1536 }
 0x16d   : > { %p1038_p11 = scmp.ne.s32.totalorder %s1418_s0, %s1037_s26  ;;  %p1042_p7 = scmp.lt.u32.totalorder %s1418_s0, %s1468_s6 }
 0x16e   : > { %p1043_p3 = scmp.lt.u32.totalorder %s1041_s24, %s1037_s26  ;;  %p1045_p13 = scmp.lt.u32.totalorder %s1037_s26, %s1418_s0 }
 0x16f   : > { %p1039_p1 = pnand %p1038_p11, %p1504_p8 }
 0x170   : > { %p1044_p2 = por %p1043_p3, %p1042_p7 }
 0x171   : > { %p1040_p4 = pneg %p1039_p1 }
 0x172   : > { %p1046_p6 = por %p1045_p13, %p1044_p2 }
 0x174   : > { %p1047_p9 = pnand %p1046_p6, %p1040_p4 }
 0x176   : > { %1050 = shalt.err (!%p1047_p9)
}
 0x177   : > { %s1104_s15 = smov 256   ;;  %s1105_s1 = smov 512  }
 0x178   : > { %s1106_s11 = smov 16  }
 0x179   : > { %874 = dma.vmem_to_hbm [thread:$0]  (%p1504_p8), %s1413_s9, 768, %s1418_s0, %s683_s25, %s1104_s15, %s1105_s1, %s1106_s11  }
 0x17a PF: > { %s1505_s16 = sld [smem:[#allocation15_spill]]  ;;  %s1506_s17 = sld [smem:[#allocation12_spill]] }
 0x17b   : > { %s711_s30 = sand.u32 1, %s1081_s21  }
 0x17c   : > { %s712_s12 = scalar_lea.sflag [#allocation4], %s711_s30 }
 0x180   : > { %p1507_p12 = scmp.ne.s32.totalorder %s1505_s16, 0  ;;  %p1508_p0 = scmp.ge.s32.totalorder %s1506_s17, 2 }
 0x182   : > { %p887_p5 = pnand %p1508_p0, %p1507_p12 }
 0x184   : > { %1076 = dma.done.wait (!%p887_p5), %s712_s12, 768  }
 0x185   : > { %1078 = vsyncadd (!%p887_p5), %s712_s12, 4294966528  ;;  %s1509_s24 = sld [smem:[#allocation13_spill]]  ;;  %s1510_s18 = sld [smem:[#allocation14_spill]] }
 0x186   : > { %s1511_s21 = smov %s1085_s22  ;;  %s1512_s22 = smov %s1089_s23 }
 0x18b   : > { %p22_p10 = scmp.ge.s32.totalorder %s1509_s24, 4   ;;  %s1513_s23 = smov %s1510_s18 }
 0x18d   :  { %24 = sbr.rel (!%p22_p10) target bundleno = 10 (0xa), region = 113 }
 0x194   :  { %717 = vsyncpa [#allocation3], 1 }
 0x195   :  { %719 = vsyncpa [#allocation3 + $0x1], 1 }
 0x196   :  { %720 = vsyncpa [#allocation6], 1 }
 0x197   :  { %722 = vsyncpa [#allocation6 + $0x1], 1 }
 0x198   :  { %723 = vsyncpa [#allocation4], 1 }
 0x199   :  { %725 = vsyncpa [#allocation4 + $0x1], 1 }

</bundles_post_ra>
